<compile_context>
chip_gen: v6e
topology: v6e:2x2x1
jax: 0.10.0
libtpu: 0.0.40
codegen_flags: <defaults>
</compile_context>

<pallas_src>
import functools

import jax
import jax.numpy as jnp
from jax.experimental import pallas as pl
from jax.experimental.pallas import tpu as pltpu


def se_kernel(x_ref, pool_ref, expand_ref, w1t_ref, w2t_ref, o_ref, *, inv_l):
    # x_ref:      (TB, C*L)  flattened, lane-dense slab of the input
    # pool_ref:   (C*L, C)   0/1 matrix; column c sums x[:, c*L:(c+1)*L]
    # expand_ref: (C,  C*L)  pool_ref.T; broadcasts a per-channel gate over L
    # w1t_ref:    (C, H)     fc[0].weight.T  (Linear(C -> H, bias=False))
    # w2t_ref:    (H, C)     fc[2].weight.T  (Linear(H -> C, bias=False))
    x = x_ref[...]                                                    # (TB, C*L)

    # Squeeze: AdaptiveAvgPool1d(1) == per-channel mean over L.
    # Channel sums via the MXU (f32 accumulation), mean via scalar scale.
    y = jnp.dot(x, pool_ref[...], preferred_element_type=jnp.float32) * inv_l  # (TB, C)

    # Excitation: Linear -> ReLU -> Linear -> Sigmoid (tiny, f32).
    h = jnp.maximum(
        jnp.dot(y, w1t_ref[...], preferred_element_type=jnp.float32), 0.0)     # (TB, H)
    s = jax.nn.sigmoid(
        jnp.dot(h, w2t_ref[...], preferred_element_type=jnp.float32))          # (TB, C)

    # Scale: broadcast the per-channel gate over the L positions with an exact
    # 0/1 MXU selection, then gate x in its own dtype (no full f32 x copy).
    gate = jnp.dot(s.astype(expand_ref.dtype), expand_ref[...],
                   preferred_element_type=jnp.float32)                          # (TB, C*L)
    o_ref[...] = (x * gate.astype(x.dtype)).astype(o_ref.dtype)


def se_layer(x, w1, w2, *, block_budget_bytes=4 * 1024 * 1024):
    """x: (B, C, L); w1: (H, C) PyTorch-style Linear weight; w2: (C, H)."""
    b, c, l = x.shape
    h = w1.shape[0]
    assert w1.shape == (h, c) and w2.shape == (c, h)

    cl = c * l
    # Free, row-major reshape -> lane dimension is C*L (dense, >= 128-friendly)
    # instead of L, so every vector store is an unmasked full-lane store.
    x2 = x.reshape(b, cl)

    # Tiny 0/1 selection matrices (C x C*L): expand[c, c*L + l] == 1.
    # NOTE: this layout trick assumes C*L*C stays small (KB/MB scale); for very
    # large C*L one would switch to a channels-last layout instead.
    expand_mat = jnp.repeat(jnp.eye(c, dtype=x.dtype), l, axis=1)     # (C, C*L)
    pool_mat = expand_mat.T                                           # (C*L, C)

    # PyTorch Linear computes y @ W.T; pre-transpose once in the wrapper.
    w1t = jnp.transpose(w1).astype(jnp.float32)                       # (C, H)
    w2t = jnp.transpose(w2).astype(jnp.float32)                       # (H, C)

    # Batch tile: largest block under the per-buffer budget so that
    # (x block + out block) x 2 buffers stays well inside v7x's 64 MiB VMEM
    # (the smallest of v5e/v6e/v7x).  Sublane dim must be a multiple of 8 or
    # equal to the full batch to satisfy the (8, 128) block rule.
    itemsize = jnp.dtype(x.dtype).itemsize
    max_tb = max(1, block_budget_bytes // (cl * itemsize))
    tb = b if max_tb >= b else min(b, max(8, (max_tb // 8) * 8))

    grid = (pl.cdiv(b, tb),)

    out2 = pl.pallas_call(
        functools.partial(se_kernel, inv_l=1.0 / float(l)),
        out_shape=jax.ShapeDtypeStruct((b, cl), x.dtype),
        grid=grid,
        in_specs=[
            pl.BlockSpec((tb, cl), lambda i: (i, 0)),   # streamed x blocks
            pl.BlockSpec((cl, c), lambda i: (0, 0)),    # resident pool matrix
            pl.BlockSpec((c, cl), lambda i: (0, 0)),    # resident expand matrix
            pl.BlockSpec((c, h), lambda i: (0, 0)),     # resident W1^T
            pl.BlockSpec((h, c), lambda i: (0, 0)),     # resident W2^T
        ],
        out_specs=pl.BlockSpec((tb, cl), lambda i: (i, 0)),
        compiler_params=pltpu.CompilerParams(
            dimension_semantics=("parallel",),          # megacore split on v7x
            vmem_limit_bytes=32 * 1024 * 1024,
        ),
    )(x2, pool_mat, expand_mat, w1t, w2t)

    return out2.reshape(b, c, l)


def reference_se_layer(x, w1, w2):
    """Pure-JAX reference matching the PyTorch forward exactly."""
    y = jnp.mean(x.astype(jnp.float32), axis=-1)          # avg_pool(x).view(b, c)
    h = jnp.maximum(y @ w1.astype(jnp.float32).T, 0.0)
    s = jax.nn.sigmoid(h @ w2.astype(jnp.float32).T)
    return (x.astype(jnp.float32) * s[:, :, None]).astype(x.dtype)


if __name__ == "__main__":
    # Small shapes consistent with the module: (batch, channel, length).
    B, C, L = 2, 64, 16
    reduction = 16
    H = C // reduction  # = 4

    key = jax.random.PRNGKey(0)
    kx, k1, k2 = jax.random.split(key, 3)

    x = jax.random.normal(kx, (B, C, L), dtype=jnp.float32)

    # Deterministic param init mimicking PyTorch Linear default
    # (uniform in [-1/sqrt(fan_in), 1/sqrt(fan_in)]).
    b1 = 1.0 / jnp.sqrt(jnp.float32(C))
    b2 = 1.0 / jnp.sqrt(jnp.float32(H))
    w1 = jax.random.uniform(k1, (H, C), dtype=jnp.float32, minval=-b1, maxval=b1)
    w2 = jax.random.uniform(k2, (C, H), dtype=jnp.float32, minval=-b2, maxval=b2)

    out = se_layer(x, w1, w2)
    out = jax.block_until_ready(out)

    ref = reference_se_layer(x, w1, w2)
    assert out.shape == (B, C, L)
    assert jnp.allclose(out, ref, atol=1e-5, rtol=1e-5), "mismatch vs reference"

    print("KERNEL_OK")
</pallas_src>

<mosaic_0001>
module attributes {stable_mosaic.version = 11 : i64} {
  func.func @se_kernel(%arg0: i32, %arg1: memref<2x1024xf32, #tpu.memory_space<vmem>>, %arg2: memref<1024x64xf32, #tpu.memory_space<vmem>>, %arg3: memref<64x1024xf32, #tpu.memory_space<vmem>>, %arg4: memref<64x4xf32, #tpu.memory_space<vmem>>, %arg5: memref<4x64xf32, #tpu.memory_space<vmem>>, %arg6: memref<2x1024xf32, #tpu.memory_space<vmem>>) attributes {dimension_semantics = [#tpu.dimension_semantics<parallel>], iteration_bounds = array<i64: 1>, scalar_prefetch = 0 : i64, scratch_operands = 0 : i64, tpu.core_type = #tpu.core_type<tc>, window_params = [{transform_indices = @transform_0, window_bounds = array<i64: 2, 1024>}, {pipeline_mode = #tpu.pipeline_mode<synchronous>, transform_indices = @transform_1, window_bounds = array<i64: 1024, 64>}, {pipeline_mode = #tpu.pipeline_mode<synchronous>, transform_indices = @transform_2, window_bounds = array<i64: 64, 1024>}, {pipeline_mode = #tpu.pipeline_mode<synchronous>, transform_indices = @transform_3, window_bounds = array<i64: 64, 4>}, {pipeline_mode = #tpu.pipeline_mode<synchronous>, transform_indices = @transform_4, window_bounds = array<i64: 4, 64>}, {transform_indices = @transform_5, window_bounds = array<i64: 2, 1024>}]} {
    %c0 = arith.constant 0 : index
    %c0_0 = arith.constant 0 : index
    %0 = vector.load %arg1[%c0, %c0_0] : memref<2x1024xf32, #tpu.memory_space<vmem>>, vector<2x1024xf32>
    %c0_1 = arith.constant 0 : index
    %c0_2 = arith.constant 0 : index
    %1 = vector.load %arg2[%c0_1, %c0_2] : memref<1024x64xf32, #tpu.memory_space<vmem>>, vector<1024x64xf32>
    %cst = arith.constant dense<0.000000e+00> : vector<2x64xf32>
    %2 = tpu.matmul %0, %1, %cst {dimension_numbers = #tpu.dot_dimension_numbers<[1], [0], [0], [1], [0, 0, 1, 1], [], []>} : vector<2x1024xf32>, vector<1024x64xf32>, vector<2x64xf32> -> vector<2x64xf32>
    %cst_3 = arith.constant 6.250000e-02 : f32
    %3 = vector.broadcast %cst_3 : f32 to vector<2x64xf32>
    %4 = arith.mulf %2, %3 : vector<2x64xf32>
    %c0_4 = arith.constant 0 : index
    %c0_5 = arith.constant 0 : index
    %5 = vector.load %arg4[%c0_4, %c0_5] : memref<64x4xf32, #tpu.memory_space<vmem>>, vector<64x4xf32>
    %cst_6 = arith.constant dense<0.000000e+00> : vector<2x4xf32>
    %6 = tpu.matmul %4, %5, %cst_6 {dimension_numbers = #tpu.dot_dimension_numbers<[1], [0], [0], [1], [0, 0, 1, 1], [], []>} : vector<2x64xf32>, vector<64x4xf32>, vector<2x4xf32> -> vector<2x4xf32>
    %cst_7 = arith.constant 0.000000e+00 : f32
    %7 = vector.broadcast %cst_7 : f32 to vector<2x4xf32>
    %8 = arith.maximumf %6, %7 : vector<2x4xf32>
    %c0_8 = arith.constant 0 : index
    %c0_9 = arith.constant 0 : index
    %9 = vector.load %arg5[%c0_8, %c0_9] : memref<4x64xf32, #tpu.memory_space<vmem>>, vector<4x64xf32>
    %cst_10 = arith.constant dense<0.000000e+00> : vector<2x64xf32>
    %10 = tpu.matmul %8, %9, %cst_10 {dimension_numbers = #tpu.dot_dimension_numbers<[1], [0], [0], [1], [0, 0, 1, 1], [], []>} : vector<2x4xf32>, vector<4x64xf32>, vector<2x64xf32> -> vector<2x64xf32>
    %11 = arith.negf %10 : vector<2x64xf32>
    %12 = math.exp %11 : vector<2x64xf32>
    %cst_11 = arith.constant 1.000000e+00 : f32
    %13 = vector.broadcast %cst_11 : f32 to vector<2x64xf32>
    %14 = arith.addf %13, %12 : vector<2x64xf32>
    %15 = arith.divf %13, %14 : vector<2x64xf32>
    %c0_12 = arith.constant 0 : index
    %c0_13 = arith.constant 0 : index
    %16 = vector.load %arg3[%c0_12, %c0_13] : memref<64x1024xf32, #tpu.memory_space<vmem>>, vector<64x1024xf32>
    %cst_14 = arith.constant dense<0.000000e+00> : vector<2x1024xf32>
    %17 = tpu.matmul %15, %16, %cst_14 {dimension_numbers = #tpu.dot_dimension_numbers<[1], [0], [0], [1], [0, 0, 1, 1], [], []>} : vector<2x64xf32>, vector<64x1024xf32>, vector<2x1024xf32> -> vector<2x1024xf32>
    %18 = arith.mulf %0, %17 : vector<2x1024xf32>
    %c0_15 = arith.constant 0 : index
    %c0_16 = arith.constant 0 : index
    %19 = vector.load %arg6[%c0_15, %c0_16] : memref<2x1024xf32, #tpu.memory_space<vmem>>, vector<2x1024xf32>
    tpu.vector_store %arg6[%c0_15, %c0_16], %18 {strides = array<i32>} : memref<2x1024xf32, #tpu.memory_space<vmem>>, vector<2x1024xf32>,
    return
  }
  func.func @transform_0(%arg0: i32) -> (i32, i32) {
    %c0_i32 = arith.constant 0 : i32
    %c0_i32_0 = arith.constant 0 : i32
    return %arg0, %c0_i32 : i32, i32
  }
  func.func @transform_1(%arg0: i32) -> (i32, i32) {
    %c0_i32 = arith.constant 0 : i32
    %c0_i32_0 = arith.constant 0 : i32
    %c0_i32_1 = arith.constant 0 : i32
    return %c0_i32, %c0_i32_0 : i32, i32
  }
  func.func @transform_2(%arg0: i32) -> (i32, i32) {
    %c0_i32 = arith.constant 0 : i32
    %c0_i32_0 = arith.constant 0 : i32
    %c0_i32_1 = arith.constant 0 : i32
    return %c0_i32, %c0_i32_0 : i32, i32
  }
  func.func @transform_3(%arg0: i32) -> (i32, i32) {
    %c0_i32 = arith.constant 0 : i32
    %c0_i32_0 = arith.constant 0 : i32
    %c0_i32_1 = arith.constant 0 : i32
    return %c0_i32, %c0_i32_0 : i32, i32
  }
  func.func @transform_4(%arg0: i32) -> (i32, i32) {
    %c0_i32 = arith.constant 0 : i32
    %c0_i32_0 = arith.constant 0 : i32
    %c0_i32_1 = arith.constant 0 : i32
    return %c0_i32, %c0_i32_0 : i32, i32
  }
  func.func @transform_5(%arg0: i32) -> (i32, i32) {
    %c0_i32 = arith.constant 0 : i32
    %c0_i32_0 = arith.constant 0 : i32
    return %arg0, %c0_i32 : i32, i32
  }
}

</mosaic_0001>

<bundles_post_ra>
// kernel: tpu_custom_call.1
= control target key start
LH: loop header
LB: loop body
LE: loop exit
PB: predicated region body
PF: predicated region fallthrough
CT: control target
= control target key end

     0   :  { %v1272_v30 = vmov 1983009808   ;;  %v157_v32 = vlaneseq  ;;  %s1966_s0 = inlined_call_operand.vmem [shape: f32[2,1024], index: 0, kind: input, shape index: {}]   ;;  %s1967_s1 = inlined_call_operand.vmem [shape: f32[1024,64], index: 1, kind: input, shape index: {}]   ;;  %s1968_s2 = inlined_call_operand.vmem [shape: f32[64,1024], index: 2, kind: input, shape index: {}]   ;;  %s1969_s3 = inlined_call_operand.vmem [shape: f32[64,4], index: 3, kind: input, shape index: {}]   ;;  %s1970_s4 = inlined_call_operand.vmem [shape: f32[4,64], index: 4, kind: input, shape index: {}]   ;;  %s1971_s5 = inlined_call_operand.hbm [shape: f32[2,1024], index: 5, kind: output, shape index: {}]  }
   0x1   :  { %v54_v0 = vld [vmem:[%s1967_s1 + $0xf8] sm:$0xff]  ;;  %v53_v4 = vld [vmem:[%s1967_s1 + $0xf0] sm:$0xff]  ;;  %v52_v8 = vld [vmem:[%s1967_s1 + $0xe8] sm:$0xff]  ;;  %v155_v31 = vunpack.c.l.s4 %v1272_v30 }
   0x2   :  { %v86_v1 = vld [vmem:[%s1967_s1 + $0x1f8] sm:$0xff]  ;;  %1065 = vmatprep.subr.mxu0 %v54_v0  ;;  %v85_v5 = vld [vmem:[%s1967_s1 + $0x1f0] sm:$0xff]  ;;  %v84_v9 = vld [vmem:[%s1967_s1 + $0x1e8] sm:$0xff]  ;;  %v158_v42 = vshrl.u32 %v157_v32, 7 }
   0x3   :  { %v38_v2 = vld [vmem:[%s1967_s1 + $0x78] sm:$0xff]  ;;  %1100 = vmatprep.subr.mxu1 %v86_v1  ;;  %v37_v6 = vld [vmem:[%s1967_s1 + $0x70] sm:$0xff]  ;;  %v36_v10 = vld [vmem:[%s1967_s1 + $0x68] sm:$0xff]  ;;  %v156_v41 = vunpack.c.0.s8 %v155_v31 }
   0x4   :  { %v70_v3 = vld [vmem:[%s1967_s1 + $0x178] sm:$0xff]  ;;  %1066 = vmatpush3.msra.mxu0 %v38_v2  ;;  %v69_v7 = vld [vmem:[%s1967_s1 + $0x170] sm:$0xff]  ;;  %v68_v11 = vld [vmem:[%s1967_s1 + $0x168] sm:$0xff] }
   0x5   :  { %1101 = vmatpush3.msra.mxu1 %v70_v3  ;;  %1067 = vmatprep.subr.mxu0 %v53_v4  ;;  %v51_v12 = vld [vmem:[%s1967_s1 + $0xe0] sm:$0xff]  ;;  %v50_v16 = vld [vmem:[%s1967_s1 + $0xd8] sm:$0xff]  ;;  %v49_v20 = vld [vmem:[%s1967_s1 + $0xd0] sm:$0xff]  ;;  %v1444_v51 = vsub.s32 %v156_v41, %v158_v42 }
   0x6   :  { %1102 = vmatprep.subr.mxu1 %v85_v5  ;;  %1068 = vmatpush3.msra.mxu0 %v37_v6  ;;  %v83_v13 = vld [vmem:[%s1967_s1 + $0x1e0] sm:$0xff]  ;;  %v82_v17 = vld [vmem:[%s1967_s1 + $0x1d8] sm:$0xff]  ;;  %v81_v21 = vld [vmem:[%s1967_s1 + $0x1d0] sm:$0xff] }
   0x7   :  { %1103 = vmatpush3.msra.mxu1 %v69_v7  ;;  %1069 = vmatprep.subr.mxu0 %v52_v8  ;;  %v35_v14 = vld [vmem:[%s1967_s1 + $0x60] sm:$0xff]  ;;  %v34_v18 = vld [vmem:[%s1967_s1 + $0x58] sm:$0xff]  ;;  %v33_v22 = vld [vmem:[%s1967_s1 + $0x50] sm:$0xff] }
   0x8   :  { %1104 = vmatprep.subr.mxu1 %v84_v9  ;;  %v67_v15 = vld [vmem:[%s1967_s1 + $0x160] sm:$0xff]  ;;  %1070 = vmatpush3.msra.mxu0 %v36_v10  ;;  %v66_v19 = vld [vmem:[%s1967_s1 + $0x158] sm:$0xff]  ;;  %v65_v23 = vld [vmem:[%s1967_s1 + $0x150] sm:$0xff] }
   0x9   :  { %1105 = vmatpush3.msra.mxu1 %v68_v11  ;;  %1071 = vmatprep.subr.mxu0 %v51_v12  ;;  %v48_v24 = vld [vmem:[%s1967_s1 + $0xc8] sm:$0xff]  ;;  %v47_v28 = vld [vmem:[%s1967_s1 + $0xc0] sm:$0xff]  ;;  %v46_v35 = vld [vmem:[%s1967_s1 + $0xb8] sm:$0xff] }
   0xa   :  { %1106 = vmatprep.subr.mxu1 %v83_v13  ;;  %1072 = vmatpush3.msra.mxu0 %v35_v14  ;;  %v80_v25 = vld [vmem:[%s1967_s1 + $0x1c8] sm:$0xff]  ;;  %v79_v29 = vld [vmem:[%s1967_s1 + $0x1c0] sm:$0xff]  ;;  %v78_v36 = vld [vmem:[%s1967_s1 + $0x1b8] sm:$0xff] }
   0xb   :  { %1107 = vmatpush3.msra.mxu1 %v67_v15  ;;  %1073 = vmatprep.subr.mxu0 %v50_v16  ;;  %v32_v26 = vld [vmem:[%s1967_s1 + $0x48] sm:$0xff]  ;;  %v31_v33 = vld [vmem:[%s1967_s1 + $0x40] sm:$0xff]  ;;  %v30_v37 = vld [vmem:[%s1967_s1 + $0x38] sm:$0xff] }
   0xc   :  { %1108 = vmatprep.subr.mxu1 %v82_v17  ;;  %1074 = vmatpush3.msra.mxu0 %v34_v18  ;;  %v64_v27 = vld [vmem:[%s1967_s1 + $0x148] sm:$0xff]  ;;  %v63_v34 = vld [vmem:[%s1967_s1 + $0x140] sm:$0xff]  ;;  %v62_v38 = vld [vmem:[%s1967_s1 + $0x138] sm:$0xff] }
   0xd   :  { %1109 = vmatpush3.msra.mxu1 %v66_v19  ;;  %1075 = vmatprep.subr.mxu0 %v49_v20  ;;  %v45_v39 = vld [vmem:[%s1967_s1 + $0xb0] sm:$0xff]  ;;  %v44_v45 = vld [vmem:[%s1967_s1 + $0xa8] sm:$0xff]  ;;  %v43_v49 = vld [vmem:[%s1967_s1 + $0xa0] sm:$0xff] }
   0xe   :  { %1110 = vmatprep.subr.mxu1 %v81_v21  ;;  %1076 = vmatpush3.msra.mxu0 %v33_v22  ;;  %v77_v40 = vld [vmem:[%s1967_s1 + $0x1b0] sm:$0xff]  ;;  %v76_v46 = vld [vmem:[%s1967_s1 + $0x1a8] sm:$0xff]  ;;  %v75_v50 = vld [vmem:[%s1967_s1 + $0x1a0] sm:$0xff] }
   0xf   :  { %1111 = vmatpush3.msra.mxu1 %v65_v23  ;;  %1077 = vmatprep.subr.mxu0 %v48_v24  ;;  %v29_v43 = vld [vmem:[%s1967_s1 + $0x30] sm:$0xff]  ;;  %v28_v47 = vld [vmem:[%s1967_s1 + $0x28] sm:$0xff]  ;;  %v27_v52 = vld [vmem:[%s1967_s1 + $0x20] sm:$0xff] }
  0x10   :  { %1112 = vmatprep.subr.mxu1 %v80_v25  ;;  %1078 = vmatpush3.msra.mxu0 %v32_v26  ;;  %v61_v44 = vld [vmem:[%s1967_s1 + $0x130] sm:$0xff]  ;;  %v60_v48 = vld [vmem:[%s1967_s1 + $0x128] sm:$0xff]  ;;  %v59_v53 = vld [vmem:[%s1967_s1 + $0x120] sm:$0xff] }
  0x11   :  { %1113 = vmatpush3.msra.mxu1 %v64_v27  ;;  %1079 = vmatprep.subr.mxu0 %v47_v28  ;;  %v1455_v54 = vld [vmem:[%s1966_s0] sm:$0xff]  ;;  %v42_v55 = vld [vmem:[%s1967_s1 + $0x98] sm:$0xff]  ;;  %v41_v60 = vld [vmem:[%s1967_s1 + $0x90] sm:$0xff] }
  0x12   :  { %1114 = vmatprep.subr.mxu1 %v79_v29  ;;  %1080 = vmatpush3.msra.mxu0 %v31_v33  ;;  %v74_v56 = vld [vmem:[%s1967_s1 + $0x198] sm:$0xff]  ;;  %v153_v57 = vcombine.high %v1455_v54, %v1455_v54  ;;  %v73_v61 = vld [vmem:[%s1967_s1 + $0x190] sm:$0xff]  ;;  %v160_v62 = vrot.slane %v1455_v54, %v1444_v51  ;;  %v40_v2 = vld [vmem:[%s1967_s1 + $0x88] sm:$0xff] }
  0x13   :  { %1115 = vmatpush3.msra.mxu1 %v63_v34  ;;  %1081 = vmatprep.subr.mxu0 %v46_v35  ;;  %v26_v58 = vld [vmem:[%s1967_s1 + $0x18] sm:$0xff]  ;;  %v25_v63 = vld [vmem:[%s1967_s1 + $0x10] sm:$0xff]  ;;  %v72_v3 = vld [vmem:[%s1967_s1 + $0x188] sm:$0xff] }
  0x14   :  { %1116 = vmatprep.subr.mxu1 %v78_v36  ;;  %1082 = vmatpush3.msra.mxu0 %v30_v37  ;;  %v58_v59 = vld [vmem:[%s1967_s1 + $0x118] sm:$0xff]  ;;  %v57_v0 = vld [vmem:[%s1967_s1 + $0x110] sm:$0xff]  ;;  %v167_v1 = vrot.slane %v153_v57, %v1444_v51  ;;  %v24_v4 = vld [vmem:[%s1967_s1 + $0x8] sm:$0xff]  ;;  %v168_v8 = vcombine.high %v160_v62, %v160_v62 }
  0x15   :  { %1117 = vmatpush3.msra.mxu1 %v62_v38  ;;  %1083 = vmatprep.subr.mxu0 %v45_v39  ;;  %v56_v5 = vld [vmem:[%s1967_s1 + $0x108] sm:$0xff]  ;;  %v39_v6 = vld [vmem:[%s1967_s1 + $0x80] sm:$0xff]  ;;  %v118_v12 = vld [vmem:[%s1967_s1 + $0x2f8] sm:$0xff] }
  0x16   :  { %1118 = vmatprep.subr.mxu1 %v77_v40  ;;  %1084 = vmatpush3.msra.mxu0 %v29_v43  ;;  %v71_v7 = vld [vmem:[%s1967_s1 + $0x180] sm:$0xff]  ;;  %v169_v10 = vcombine.high %v167_v1, %v167_v1  ;;  %v150_v13 = vld [vmem:[%s1967_s1 + $0x3f8] sm:$0xff]  ;;  %v117_v16 = vld [vmem:[%s1967_s1 + $0x2f0] sm:$0xff] }
  0x17   :  { %1119 = vmatpush3.msra.mxu1 %v61_v44  ;;  %1085 = vmatprep.subr.mxu0 %v44_v45  ;;  %v23_v9 = vld [vmem:[%s1967_s1] sm:$0xff]  ;;  %v102_v14 = vld [vmem:[%s1967_s1 + $0x278] sm:$0xff]  ;;  %v149_v17 = vld [vmem:[%s1967_s1 + $0x3f0] sm:$0xff] }
  0x18   :  { %1120 = vmatprep.subr.mxu1 %v76_v46  ;;  %1086 = vmatpush3.msra.mxu0 %v28_v47  ;;  %v55_v11 = vld [vmem:[%s1967_s1 + $0x100] sm:$0xff]  ;;  %v134_v15 = vld [vmem:[%s1967_s1 + $0x378] sm:$0xff]  ;;  %v101_v18 = vld [vmem:[%s1967_s1 + $0x270] sm:$0xff] }
  0x19   :  { %1121 = vmatpush3.msra.mxu1 %v60_v48  ;;  %1087 = vmatprep.subr.mxu0 %v43_v49  ;;  %v133_v19 = vld [vmem:[%s1967_s1 + $0x370] sm:$0xff]  ;;  %v116_v20 = vld [vmem:[%s1967_s1 + $0x2e8] sm:$0xff]  ;;  %v115_v24 = vld [vmem:[%s1967_s1 + $0x2e0] sm:$0xff] }
  0x1a   :  { %1122 = vmatprep.subr.mxu1 %v75_v50  ;;  %1088 = vmatpush3.msra.mxu0 %v27_v52  ;;  %v148_v21 = vld [vmem:[%s1967_s1 + $0x3e8] sm:$0xff]  ;;  %v147_v25 = vld [vmem:[%s1967_s1 + $0x3e0] sm:$0xff]  ;;  %v114_v28 = vld [vmem:[%s1967_s1 + $0x2d8] sm:$0xff] }
  0x1b   :  { %1123 = vmatpush3.msra.mxu1 %v59_v53  ;;  %1089 = vmatprep.subr.mxu0 %v42_v55  ;;  %v100_v22 = vld [vmem:[%s1967_s1 + $0x268] sm:$0xff]  ;;  %v99_v26 = vld [vmem:[%s1967_s1 + $0x260] sm:$0xff]  ;;  %v146_v29 = vld [vmem:[%s1967_s1 + $0x3d8] sm:$0xff] }
  0x1c   :  { %1124 = vmatprep.subr.mxu1 %v74_v56  ;;  %1090 = vmatpush3.msra.mxu0 %v26_v58  ;;  %v132_v23 = vld [vmem:[%s1967_s1 + $0x368] sm:$0xff]  ;;  %v131_v27 = vld [vmem:[%s1967_s1 + $0x360] sm:$0xff]  ;;  %v98_v30 = vld [vmem:[%s1967_s1 + $0x258] sm:$0xff] }
  0x1d   :  { %1125 = vmatpush3.msra.mxu1 %v58_v59  ;;  %1091 = vmatprep.subr.mxu0 %v41_v60  ;;  %v130_v31 = vld [vmem:[%s1967_s1 + $0x358] sm:$0xff]  ;;  %v113_v32 = vld [vmem:[%s1967_s1 + $0x2d0] sm:$0xff] }
  0x1e   :  { %1126 = vmatprep.subr.mxu1 %v73_v61  ;;  %1092 = vmatpush3.msra.mxu0 %v25_v63  ;;  %v145_v33 = vld [vmem:[%s1967_s1 + $0x3d0] sm:$0xff] }
  0x1f   :  { %1127 = vmatpush3.msra.mxu1 %v57_v0  ;;  %1093 = vmatprep.subr.mxu0 %v40_v2  ;;  %v97_v34 = vld [vmem:[%s1967_s1 + $0x250] sm:$0xff] }
  0x20   :  { %1128 = vmatprep.subr.mxu1 %v72_v3  ;;  %1094 = vmatpush3.msra.mxu0 %v24_v4  ;;  %v129_v35 = vld [vmem:[%s1967_s1 + $0x350] sm:$0xff] }
  0x21   :  { %1129 = vmatpush3.msra.mxu1 %v56_v5  ;;  %1095 = vmatprep.subr.mxu0 %v39_v6 }
  0x22   :  { %1130 = vmatprep.subr.mxu1 %v71_v7  ;;  %1096 = vmatpush3.msra.mxu0 %v23_v9 }
  0x23   :  { %259 = vmatprep.mubr.f32.mxu0 %v168_v8  ;;  %1131 = vmatpush3.msra.mxu1 %v55_v11 }
  0x24   :  { %329 = vmatprep.mubr.f32.mxu1 %v169_v10  ;;  %260 = vmatmul.mubr.f32.vlgmr.msra.gmra.mxu0 %v160_v62 }
  0x25   :  { %330 = vmatmul.mubr.f32.vlgmr.msra.gmra.mxu1 %v167_v1  ;;  %1135 = vmatprep.subr.mxu0 %v118_v12 }
  0x26   :  { %1170 = vmatprep.subr.mxu1 %v150_v13  ;;  %1136 = vmatpush3.msra.mxu0 %v102_v14 }
  0x27   :  { %1171 = vmatpush3.msra.mxu1 %v134_v15  ;;  %1137 = vmatprep.subr.mxu0 %v117_v16 }
  0x28   :  { %1172 = vmatprep.subr.mxu1 %v149_v17  ;;  %1138 = vmatpush3.msra.mxu0 %v101_v18 }
  0x29   :  { %1173 = vmatpush3.msra.mxu1 %v133_v19  ;;  %1139 = vmatprep.subr.mxu0 %v116_v20 }
  0x2a   :  { %1174 = vmatprep.subr.mxu1 %v148_v21  ;;  %1140 = vmatpush3.msra.mxu0 %v100_v22 }
  0x2b   :  { %1175 = vmatpush3.msra.mxu1 %v132_v23  ;;  %1141 = vmatprep.subr.mxu0 %v115_v24 }
  0x2c   :  { %1176 = vmatprep.subr.mxu1 %v147_v25  ;;  %1142 = vmatpush3.msra.mxu0 %v99_v26 }
  0x2d   :  { %1177 = vmatpush3.msra.mxu1 %v131_v27  ;;  %1143 = vmatprep.subr.mxu0 %v114_v28 }
  0x2e   :  { %1178 = vmatprep.subr.mxu1 %v146_v29 }
  0x2f   :  { %10 = vsyncpa [#allocation3], 0  ;;  %1144 = vmatpush3.msra.mxu0 %v98_v30  ;;  %1179 = vmatpush3.msra.mxu1 %v130_v31  ;;  %v112_v36 = vld [vmem:[%s1967_s1 + $0x2c8] sm:$0xff]  ;;  %v111_v40 = vld [vmem:[%s1967_s1 + $0x2c0] sm:$0xff]  ;;  %v1273_v21 = vmov 0.0   ;;  %vm1274_vm0 = vmmov 0  }
  0x30   :  { %v144_v37 = vld [vmem:[%s1967_s1 + $0x3c8] sm:$0xff]  ;;  %1145 = vmatprep.subr.mxu0 %v113_v32  ;;  %1180 = vmatprep.subr.mxu1 %v145_v33  ;;  %v143_v41 = vld [vmem:[%s1967_s1 + $0x3c0] sm:$0xff]  ;;  %v110_v44 = vld [vmem:[%s1967_s1 + $0x2b8] sm:$0xff]  ;;  %vm564_vm1 = vcmask 1043456   ;;  %vm484_vm2 = vcmask 523264   ;;  %vm560_vm3 = vcmask 31744  }
  0x31   :  { %v96_v38 = vld [vmem:[%s1967_s1 + $0x248] sm:$0xff]  ;;  %1146 = vmatpush3.msra.mxu0 %v97_v34  ;;  %1181 = vmatpush3.msra.mxu1 %v129_v35  ;;  %v95_v42 = vld [vmem:[%s1967_s1 + $0x240] sm:$0xff]  ;;  %v142_v45 = vld [vmem:[%s1967_s1 + $0x3b8] sm:$0xff] }
  0x32   :  { %v128_v39 = vld [vmem:[%s1967_s1 + $0x348] sm:$0xff]  ;;  %1147 = vmatprep.subr.mxu0 %v112_v36  ;;  %1182 = vmatprep.subr.mxu1 %v144_v37  ;;  %v127_v43 = vld [vmem:[%s1967_s1 + $0x340] sm:$0xff]  ;;  %v94_v46 = vld [vmem:[%s1967_s1 + $0x238] sm:$0xff] }
  0x33   :  { %1148 = vmatpush3.msra.mxu0 %v96_v38  ;;  %1183 = vmatpush3.msra.mxu1 %v128_v39  ;;  %v126_v47 = vld [vmem:[%s1967_s1 + $0x338] sm:$0xff]  ;;  %v109_v48 = vld [vmem:[%s1967_s1 + $0x2b0] sm:$0xff]  ;;  %v108_v53 = vld [vmem:[%s1967_s1 + $0x2a8] sm:$0xff] }
  0x34   :  { %1149 = vmatprep.subr.mxu0 %v111_v40  ;;  %1184 = vmatprep.subr.mxu1 %v143_v41  ;;  %v141_v49 = vld [vmem:[%s1967_s1 + $0x3b0] sm:$0xff]  ;;  %v140_v55 = vld [vmem:[%s1967_s1 + $0x3a8] sm:$0xff]  ;;  %v107_v59 = vld [vmem:[%s1967_s1 + $0x2a0] sm:$0xff] }
  0x35   :  { %1150 = vmatpush3.msra.mxu0 %v95_v42  ;;  %1185 = vmatpush3.msra.mxu1 %v127_v43  ;;  %v93_v50 = vld [vmem:[%s1967_s1 + $0x230] sm:$0xff]  ;;  %v1639_v56 = vld [vmem:[%s1966_s0 + $0x8] sm:$0xff]  ;;  %v139_v60 = vld [vmem:[%s1967_s1 + $0x3a0] sm:$0xff] }
  0x36   :  { %1151 = vmatprep.subr.mxu0 %v110_v44  ;;  %1186 = vmatprep.subr.mxu1 %v142_v45  ;;  %v125_v52 = vld [vmem:[%s1967_s1 + $0x330] sm:$0xff]  ;;  %v92_v57 = vld [vmem:[%s1967_s1 + $0x228] sm:$0xff]  ;;  %v91_v61 = vld [vmem:[%s1967_s1 + $0x220] sm:$0xff]  ;;  %v170_v63 = vcombine.high %v1639_v56, %v1639_v56  ;;  %v177_v6 = vrot.slane %v1639_v56, %v1444_v51 }
  0x37   :  { %1152 = vmatpush3.msra.mxu0 %v94_v46  ;;  %1187 = vmatpush3.msra.mxu1 %v126_v47  ;;  %v124_v58 = vld [vmem:[%s1967_s1 + $0x328] sm:$0xff]  ;;  %v123_v62 = vld [vmem:[%s1967_s1 + $0x320] sm:$0xff]  ;;  %v106_v0 = vld [vmem:[%s1967_s1 + $0x298] sm:$0xff] }
  0x38   :  { %1153 = vmatprep.subr.mxu0 %v109_v48  ;;  %1188 = vmatprep.subr.mxu1 %v141_v49  ;;  %v138_v1 = vld [vmem:[%s1967_s1 + $0x398] sm:$0xff]  ;;  %v105_v4 = vld [vmem:[%s1967_s1 + $0x290] sm:$0xff]  ;;  %v184_v9 = vrot.slane %v170_v63, %v1444_v51  ;;  %v104_v10 = vld [vmem:[%s1967_s1 + $0x288] sm:$0xff]  ;;  %v185_v16 = vcombine.high %v177_v6, %v177_v6 }
  0x39   :  { %1154 = vmatpush3.msra.mxu0 %v93_v50  ;;  %1189 = vmatpush3.msra.mxu1 %v125_v52  ;;  %v90_v2 = vld [vmem:[%s1967_s1 + $0x218] sm:$0xff]  ;;  %v137_v5 = vld [vmem:[%s1967_s1 + $0x390] sm:$0xff]  ;;  %v136_v11 = vld [vmem:[%s1967_s1 + $0x388] sm:$0xff] }
  0x3a   :  { %1155 = vmatprep.subr.mxu0 %v108_v53  ;;  %1190 = vmatprep.subr.mxu1 %v140_v55  ;;  %v122_v3 = vld [vmem:[%s1967_s1 + $0x318] sm:$0xff]  ;;  %v89_v7 = vld [vmem:[%s1967_s1 + $0x210] sm:$0xff]  ;;  %v88_v12 = vld [vmem:[%s1967_s1 + $0x208] sm:$0xff]  ;;  %v186_v18 = vcombine.high %v184_v9, %v184_v9 }
  0x3b   :  { %1156 = vmatpush3.msra.mxu0 %v92_v57  ;;  %1191 = vmatpush3.msra.mxu1 %v124_v58  ;;  %v121_v8 = vld [vmem:[%s1967_s1 + $0x310] sm:$0xff]  ;;  %v120_v13 = vld [vmem:[%s1967_s1 + $0x308] sm:$0xff]  ;;  %v103_v14 = vld [vmem:[%s1967_s1 + $0x280] sm:$0xff] }
  0x3c   :  { %1157 = vmatprep.subr.mxu0 %v107_v59  ;;  %1192 = vmatprep.subr.mxu1 %v139_v60  ;;  %v135_v15 = vld [vmem:[%s1967_s1 + $0x380] sm:$0xff]  ;;  %v483_v20 = vld [vmem:[%s1969_s3 + $0x38] sm:$0xff]  ;;  %v482_v22 = vld [vmem:[%s1969_s3 + $0x30] sm:$0xff] }
  0x3d   :  { %1158 = vmatpush3.msra.mxu0 %v91_v61  ;;  %1193 = vmatpush3.msra.mxu1 %v123_v62  ;;  %v87_v17 = vld [vmem:[%s1967_s1 + $0x200] sm:$0xff]  ;;  %v481_v23 = vld [vmem:[%s1969_s3 + $0x28] sm:$0xff]  ;;  %v479_v25 = vld [vmem:[%s1969_s3 + $0x18] sm:$0xff] }
  0x3e   :  { %1159 = vmatprep.subr.mxu0 %v106_v0  ;;  %1194 = vmatprep.subr.mxu1 %v138_v1  ;;  %v119_v19 = vld [vmem:[%s1967_s1 + $0x300] sm:$0xff]  ;;  %v478_v26 = vld [vmem:[%s1969_s3 + $0x10] sm:$0xff]  ;;  %v477_v27 = vld [vmem:[%s1969_s3 + $0x8] sm:$0xff] }
  0x3f   :  { %1160 = vmatpush3.msra.mxu0 %v90_v2  ;;  %1195 = vmatpush3.msra.mxu1 %v122_v3  ;;  %v480_v24 = vld [vmem:[%s1969_s3 + $0x20] sm:$0xff]  ;;  %v701_v49 = vld [vmem:[%s1968_s2 + $0x1c8] sm:$0xff]  ;;  %v703_v50 = vld [vmem:[%s1968_s2 + $0x1d8] sm:$0xff] }
  0x40   :  { %1161 = vmatprep.subr.mxu0 %v105_v4  ;;  %1196 = vmatprep.subr.mxu1 %v137_v5  ;;  %v476_v28 = vld [vmem:[%s1969_s3] sm:$0xff]  ;;  %v702_v53 = vld [vmem:[%s1968_s2 + $0x1d0] sm:$0xff]  ;;  %v693_v55 = vld [vmem:[%s1968_s2 + $0x188] sm:$0xff] }
  0x41   :  { %1162 = vmatpush3.msra.mxu0 %v89_v7  ;;  %1197 = vmatpush3.msra.mxu1 %v121_v8  ;;  %v559_v29 = vld [vmem:[%s1970_s4] sm:$0xf]  ;;  %v695_v57 = vld [vmem:[%s1968_s2 + $0x198] sm:$0xff]  ;;  %v694_v59 = vld [vmem:[%s1968_s2 + $0x190] sm:$0xff] }
  0x42   :  { %1163 = vmatprep.subr.mxu0 %v104_v10  ;;  %1198 = vmatprep.subr.mxu1 %v136_v11  ;;  %v700_v52 = vld [vmem:[%s1968_s2 + $0x1c0] sm:$0xff]  ;;  %v685_v60 = vld [vmem:[%s1968_s2 + $0x148] sm:$0xff]  ;;  %v687_v61 = vld [vmem:[%s1968_s2 + $0x158] sm:$0xff] }
  0x43   :  { %1164 = vmatpush3.msra.mxu0 %v88_v12  ;;  %1199 = vmatpush3.msra.mxu1 %v120_v13  ;;  %v692_v58 = vld [vmem:[%s1968_s2 + $0x180] sm:$0xff]  ;;  %v686_v63 = vld [vmem:[%s1968_s2 + $0x150] sm:$0xff]  ;;  %v677_v0 = vld [vmem:[%s1968_s2 + $0x108] sm:$0xff] }
  0x44   :  { %1165 = vmatprep.subr.mxu0 %v103_v14  ;;  %1200 = vmatprep.subr.mxu1 %v135_v15  ;;  %v684_v62 = vld [vmem:[%s1968_s2 + $0x140] sm:$0xff]  ;;  %v679_v1 = vld [vmem:[%s1968_s2 + $0x118] sm:$0xff]  ;;  %v678_v3 = vld [vmem:[%s1968_s2 + $0x110] sm:$0xff] }
  0x45   :  { %1166 = vmatpush3.msra.mxu0 %v87_v17  ;;  %399 = vmatprep.mubr.f32.mxu0 %v185_v16  ;;  %v676_v2 = vld [vmem:[%s1968_s2 + $0x100] sm:$0xff]  ;;  %v669_v4 = vld [vmem:[%s1968_s2 + $0xc8] sm:$0xff]  ;;  %v671_v5 = vld [vmem:[%s1968_s2 + $0xd8] sm:$0xff] }
  0x46   :  { %1201 = vmatpush3.msra.mxu1 %v119_v19  ;;  %469 = vmatprep.mubr.f32.mxu1 %v186_v18  ;;  %v670_v7 = vld [vmem:[%s1968_s2 + $0xd0] sm:$0xff]  ;;  %v661_v8 = vld [vmem:[%s1968_s2 + $0x88] sm:$0xff]  ;;  %v660_v10 = vld [vmem:[%s1968_s2 + $0x80] sm:$0xff] }
  0x47   :  { %400 = vmatmul.mubr.f32.vlgmr.msra.gmra.mxu0 %v177_v6  ;;  %470 = vmatmul.mubr.f32.vlgmr.msra.gmra.mxu1 %v184_v9  ;;  %v668_v6 = vld [vmem:[%s1968_s2 + $0xc0] sm:$0xff]  ;;  %v663_v9 = vld [vmem:[%s1968_s2 + $0x98] sm:$0xff]  ;;  %v662_v11 = vld [vmem:[%s1968_s2 + $0x90] sm:$0xff] }
  0x48   :  { %1216 = vmatprep.subr.mxu0 %v1273_v21  ;;  %1235 = vmatprep.subr.mxu1 %v1273_v21  ;;  %v653_v12 = vld [vmem:[%s1968_s2 + $0x48] sm:$0xff]  ;;  %v655_v13 = vld [vmem:[%s1968_s2 + $0x58] sm:$0xff]  ;;  %v652_v14 = vld [vmem:[%s1968_s2 + $0x40] sm:$0xff] }
  0x49   :  { %1217 = vmatpush3.msra.mxu0 %v483_v20  ;;  %1232 = vmatprep.mubr.msk.f32.mxu0 %vm1274_vm0, %v1273_v21  ;;  %v654_v15 = vld [vmem:[%s1968_s2 + $0x50] sm:$0xff]  ;;  %v645_v16 = vld [vmem:[%s1968_s2 + $0x8] sm:$0xff]  ;;  %v647_v17 = vld [vmem:[%s1968_s2 + $0x18] sm:$0xff] }
  0x4a   :  { %1218 = vmatprep.subr.mxu0 %v1273_v21  ;;  %1237 = vmatprep.mubr.msk.f32.mxu1 %vm1274_vm0, %v1273_v21  ;;  %v644_v18 = vld [vmem:[%s1968_s2] sm:$0xff]  ;;  %v646_v19 = vld [vmem:[%s1968_s2 + $0x10] sm:$0xff]  ;;  %v705_v20 = vld [vmem:[%s1968_s2 + $0x1e8] sm:$0xff] }
  0x4b   :  { %1219 = vmatpush3.msra.mxu0 %v482_v22  ;;  %1236 = vmatpush3.msk.msra.mxu1 %vm564_vm1, %v559_v29  ;;  %v707_v22 = vld [vmem:[%s1968_s2 + $0x1f8] sm:$0xff]  ;;  %v706_v29 = vld [vmem:[%s1968_s2 + $0x1f0] sm:$0xff] }
  0x4c   :  { %1220 = vmatprep.subr.mxu0 %v1273_v21  ;;  %727 = vmatprep.subr.mxu1 %v701_v49  ;;  %v664_v49 = vld [vmem:[%s1968_s2 + $0xa0] sm:$0xff] }
  0x4d   :  { %1221 = vmatpush3.msra.mxu0 %v481_v23 }
  0x4e   :  { %1222 = vmatprep.subr.mxu0 %v1273_v21 }
  0x4f   :  { %1223 = vmatpush3.msra.mxu0 %v480_v24 }
  0x50   :  { %1224 = vmatprep.subr.mxu0 %v1273_v21 }
  0x51   :  { %1225 = vmatpush3.msra.mxu0 %v479_v25 }
  0x52   :  { %1226 = vmatprep.subr.mxu0 %v1273_v21 }
  0x53   :  { %1227 = vmatpush3.msra.mxu0 %v478_v26 }
  0x54   :  { %1228 = vmatprep.subr.mxu0 %v1273_v21 }
  0x55   :  { %1229 = vmatpush3.msra.mxu0 %v477_v27 }
  0x56   :  { %1230 = vmatprep.subr.mxu0 %v1273_v21 }
  0x57   :  { %1231 = vmatpush3.msra.mxu0 %v476_v28  ;;  %v704_v28 = vld [vmem:[%s1968_s2 + $0x1e0] sm:$0xff] }
  0x58   :  { %798 = vmatprep.subr.mxu0 %v703_v50  ;;  %v666_v50 = vld [vmem:[%s1968_s2 + $0xb0] sm:$0xff] }
  0xe4   :  { %v1097_v30 = vpop.f32.mrf.mxu0 }
  0xe5   :  { %v1132_v31 = vpop.f32.mrf.mxu1 }
  0xe6   :  { %v1098_v32 = vpop.f32.mrf.mxu0 }
  0xe7   :  { %v1133_v33 = vpop.f32.mrf.mxu1  ;;  %v1099_v34 = vadd.f32 %v1098_v32, %v1097_v30  ;;  %v699_v32 = vld [vmem:[%s1968_s2 + $0x1b8] sm:$0xff] }
  0xe8   :  { %v1134_v35 = vadd.f32 %v1133_v33, %v1132_v31  ;;  %v697_v31 = vld [vmem:[%s1968_s2 + $0x1a8] sm:$0xff]  ;;  %v696_v33 = vld [vmem:[%s1968_s2 + $0x1a0] sm:$0xff] }
  0xea   :  { %v332_v40 = vadd.f32 %v1134_v35, %v1099_v34  ;;  %v698_v34 = vld [vmem:[%s1968_s2 + $0x1b0] sm:$0xff]  ;;  %v689_v35 = vld [vmem:[%s1968_s2 + $0x168] sm:$0xff] }
 0x107   :  { %v1167_v36 = vpop.f32.mrf.mxu0  ;;  %v1202_v37 = vpop.f32.mrf.mxu1 }
 0x109   :  { %v1168_v38 = vpop.f32.mrf.mxu0  ;;  %v1203_v39 = vpop.f32.mrf.mxu1 }
 0x10a   :  { %v1169_v41 = vadd.f32 %v1168_v38, %v1167_v36  ;;  %v1204_v43 = vadd.f32 %v1203_v39, %v1202_v37  ;;  %v691_v36 = vld [vmem:[%s1968_s2 + $0x178] sm:$0xff]  ;;  %v688_v37 = vld [vmem:[%s1968_s2 + $0x160] sm:$0xff]  ;;  %v690_v38 = vld [vmem:[%s1968_s2 + $0x170] sm:$0xff] }
 0x10b   :  { %v681_v39 = vld [vmem:[%s1968_s2 + $0x128] sm:$0xff] }
 0x10c   :  { %v402_v42 = vadd.f32 %v1169_v41, %v332_v40  ;;  %v683_v40 = vld [vmem:[%s1968_s2 + $0x138] sm:$0xff]  ;;  %v680_v41 = vld [vmem:[%s1968_s2 + $0x120] sm:$0xff] }
 0x10e   :  { %v472_v44 = vadd.f32 %v1204_v43, %v402_v42  ;;  %v682_v42 = vld [vmem:[%s1968_s2 + $0x130] sm:$0xff]  ;;  %v673_v43 = vld [vmem:[%s1968_s2 + $0xe8] sm:$0xff] }
 0x110   :  { %v475_v45 = vmul.f32 0.0625, %v472_v44  ;;  %v675_v44 = vld [vmem:[%s1968_s2 + $0xf8] sm:$0xff] }
 0x112   :  { %1233 = vmatmul.mubr.msk.f32.vlgmr.msra.gmra.mxu0 %vm484_vm2, %v475_v45  ;;  %v672_v45 = vld [vmem:[%s1968_s2 + $0xe0] sm:$0xff] }
 0x113   :  { %846 = vmatprep.mubr.f32.mxu0 %v1273_v21  ;;  %799 = vmatpush1.msra.mxu0 %v702_v53  ;;  %v659_v53 = vld [vmem:[%s1968_s2 + $0x78] sm:$0xff] }
 0x114   :  { %800 = vmatprep.subr.mxu0 %v695_v57  ;;  %v658_v57 = vld [vmem:[%s1968_s2 + $0x70] sm:$0xff] }
 0x115   :  { %801 = vmatpush1.msra.mxu0 %v694_v59  ;;  %v651_v59 = vld [vmem:[%s1968_s2 + $0x38] sm:$0xff] }
 0x116   :  { %802 = vmatprep.subr.mxu0 %v687_v61  ;;  %v650_v61 = vld [vmem:[%s1968_s2 + $0x30] sm:$0xff] }
 0x117   :  { %803 = vmatpush1.msra.mxu0 %v686_v63 }
 0x118   :  { %804 = vmatprep.subr.mxu0 %v679_v1 }
 0x119   :  { %805 = vmatpush1.msra.mxu0 %v678_v3 }
 0x11a   :  { %806 = vmatprep.subr.mxu0 %v671_v5 }
 0x11b   :  { %807 = vmatpush1.msra.mxu0 %v670_v7 }
 0x11c   :  { %808 = vmatprep.subr.mxu0 %v663_v9 }
 0x11d   :  { %809 = vmatpush1.msra.mxu0 %v662_v11 }
 0x11e   :  { %810 = vmatprep.subr.mxu0 %v655_v13 }
 0x11f   :  { %811 = vmatpush1.msra.mxu0 %v654_v15 }
 0x120   :  { %812 = vmatprep.subr.mxu0 %v647_v17 }
 0x121   :  { %813 = vmatpush1.msra.mxu0 %v646_v19 }
 0x122   :  { %940 = vmatprep.subr.mxu0 %v707_v22 }
 0x1d2   :  { %v554_v46 = vpop.f32.mrf.mxu0 }
 0x1d3   :  { %v558_v47 = vmax.f32 %v554_v46, 0.0  ;;  %v674_v46 = vld [vmem:[%s1968_s2 + $0xf0] sm:$0xff] }
 0x1d4   :  { %v1234_v48 = vpop.f32.mrf.mxu0 }
 0x1d5   :  { %1238 = vmatmul.mubr.msk.f32.vlgmr.msra.gmra.mxu1 %vm560_vm3, %v558_v47  ;;  %v665_v47 = vld [vmem:[%s1968_s2 + $0xa8] sm:$0xff]  ;;  %v667_v48 = vld [vmem:[%s1968_s2 + $0xb8] sm:$0xff] }
 0x1d6   :  { %775 = vmatprep.mubr.f32.mxu1 %v1273_v21  ;;  %728 = vmatpush1.msra.mxu1 %v700_v52  ;;  %v657_v52 = vld [vmem:[%s1968_s2 + $0x68] sm:$0xff] }
 0x1d7   :  { %729 = vmatprep.subr.mxu1 %v693_v55  ;;  %v656_v55 = vld [vmem:[%s1968_s2 + $0x60] sm:$0xff] }
 0x1d8   :  { %730 = vmatpush1.msra.mxu1 %v692_v58  ;;  %v649_v58 = vld [vmem:[%s1968_s2 + $0x28] sm:$0xff] }
 0x1d9   :  { %731 = vmatprep.subr.mxu1 %v685_v60  ;;  %v648_v60 = vld [vmem:[%s1968_s2 + $0x20] sm:$0xff]  ;;  %s1275_s2 = smov [#allocation2]  }
 0x1da   :  { %732 = vmatpush1.msra.mxu1 %v684_v62  ;;  %s1049_s27 = sshll.u32 %s1275_s2, 4  ;;  %s1050_s27 = int_to_ptr.vmem [resolvable:$true] %s1049_s27 }
 0x1db   :  { %733 = vmatprep.subr.mxu1 %v677_v0  ;;  %s1250_s28 = scalar_lea.vmem %s1050_s27, 256  ;;  %p1255_p1 = scmp.lt.s32.totalorder %s1050_s27, %s1050_s27 }
 0x1dc   :  { %734 = vmatpush1.msra.mxu1 %v676_v2  ;;  %p1251_p0 = scmp.ne.s32.totalorder %s1050_s27, %s1250_s28  ;;  %p1256_p2 = scmp.lt.s32.totalorder %s1250_s28, %s1250_s28 }
 0x1dd   :  { %735 = vmatprep.subr.mxu1 %v669_v4 }
 0x1de   :  { %736 = vmatpush1.msra.mxu1 %v668_v6  ;;  %p1257_p3 = por %p1256_p2, %p1255_p1 }
 0x1df   :  { %737 = vmatprep.subr.mxu1 %v661_v8 }
 0x1e0   :  { %738 = vmatpush1.msra.mxu1 %v660_v10  ;;  %p1258_p4 = pnand %p1257_p3, %p1251_p0 }
 0x1e1   :  { %739 = vmatprep.subr.mxu1 %v653_v12 }
 0x1e2   :  { %740 = vmatpush1.msra.mxu1 %v652_v14 }
 0x1e3   :  { %741 = vmatprep.subr.mxu1 %v645_v16 }
 0x1e4   :  { %742 = vmatpush1.msra.mxu1 %v644_v18 }
 0x1e5   :  { %869 = vmatprep.subr.mxu1 %v705_v20 }
 0x295   :  { %v634_v23 = vpop.f32.mrf.mxu1 }
 0x296   :  { %v1060_v24 = vmul.f32 -1.442695, %v634_v23 }
 0x297   :  { %v1239_v25 = vpop.f32.mrf.mxu1 }
 0x298   :  { %1246 = vpow2.f32 %v1060_v24 }
 0x2a5   :  { %v1247_v26 = vpop.eup %1246 }
 0x2a6   :  { %v641_v27 = vadd.f32 1.0, %v1247_v26 }
 0x2a8   :  { %1248 = vrcp.f32 %v641_v27 }
 0x2b5   :  { %v1861_v30 = vpop.eup %1248 }
 0x2b6   :  { %1061 = vmatmul.mubr.msk.f32.vlgmr.msra.gmra.mxu1 %vm484_vm2, %v1861_v30  ;;  %1062 = vmatmul.mubr.msk.f32.vlgmr.msra.gmra.mxu0 %vm484_vm2, %v1861_v30 }
 0x2b7   :  { %870 = vmatpush1.msra.mxu1 %v704_v28  ;;  %941 = vmatpush1.msra.mxu0 %v706_v29 }
 0x2b8   :  { %871 = vmatprep.subr.mxu1 %v697_v31  ;;  %942 = vmatprep.subr.mxu0 %v699_v32 }
 0x2b9   :  { %872 = vmatpush1.msra.mxu1 %v696_v33  ;;  %943 = vmatpush1.msra.mxu0 %v698_v34 }
 0x2ba   :  { %873 = vmatprep.subr.mxu1 %v689_v35  ;;  %944 = vmatprep.subr.mxu0 %v691_v36 }
 0x2bb   :  { %874 = vmatpush1.msra.mxu1 %v688_v37  ;;  %945 = vmatpush1.msra.mxu0 %v690_v38 }
 0x2bc   :  { %875 = vmatprep.subr.mxu1 %v681_v39  ;;  %946 = vmatprep.subr.mxu0 %v683_v40 }
 0x2bd   :  { %876 = vmatpush1.msra.mxu1 %v680_v41  ;;  %947 = vmatpush1.msra.mxu0 %v682_v42 }
 0x2be   :  { %877 = vmatprep.subr.mxu1 %v673_v43  ;;  %948 = vmatprep.subr.mxu0 %v675_v44 }
 0x2bf   :  { %878 = vmatpush1.msra.mxu1 %v672_v45  ;;  %949 = vmatpush1.msra.mxu0 %v674_v46 }
 0x2c0   :  { %879 = vmatprep.subr.mxu1 %v665_v47  ;;  %950 = vmatprep.subr.mxu0 %v667_v48 }
 0x2c1   :  { %880 = vmatpush1.msra.mxu1 %v664_v49  ;;  %951 = vmatpush1.msra.mxu0 %v666_v50 }
 0x2c2   :  { %881 = vmatprep.subr.mxu1 %v657_v52  ;;  %952 = vmatprep.subr.mxu0 %v659_v53 }
 0x2c3   :  { %882 = vmatpush1.msra.mxu1 %v656_v55  ;;  %953 = vmatpush1.msra.mxu0 %v658_v57 }
 0x2c4   :  { %883 = vmatprep.subr.mxu1 %v649_v58  ;;  %954 = vmatprep.subr.mxu0 %v651_v59 }
 0x2c5   :  { %884 = vmatpush1.msra.mxu1 %v648_v60  ;;  %917 = vmatprep.mubr.f32.mxu1 %v1273_v21 }
 0x2c6   :  { %955 = vmatpush1.msra.mxu0 %v650_v61  ;;  %988 = vmatprep.mubr.f32.mxu0 %v1273_v21 }
 0x2c7   :  { %1063 = vmatmul.mubr.msk.f32.vlgmr.msra.gmra.mxu1 %vm484_vm2, %v1861_v30  ;;  %1064 = vmatmul.mubr.msk.f32.vlgmr.msra.gmra.mxu0 %vm484_vm2, %v1861_v30 }
 0x376   :  { %v777_v62 = vpop.f32.mrf.mxu1  ;;  %v848_v63 = vpop.f32.mrf.mxu0 }
 0x378   :  { %v779_v0 = vpop.f32.mrf.mxu1  ;;  %v850_v1 = vpop.f32.mrf.mxu0 }
 0x379   :  { %v1003_v2 = vcombine.low %v777_v62, %v779_v0  ;;  %v1004_v3 = vcombine.low %v848_v63, %v850_v1 }
 0x37b   :  { %v1011_v4 = vrot.slane %v1003_v2, %v1444_v51  ;;  %v1018_v5 = vrot.slane %v1004_v3, %v1444_v51 }
 0x37d   :  { %v1019_v6 = vcombine.low %v1011_v4, %v1018_v5 }
 0x37f   :  { %v1039_v7 = vmul.f32 %v1019_v6, %v1455_v54 }
 0x381   :  { %1041 = vst [vmem:[#allocation2] sm:$0xff] %v1039_v7 }
 0x387   :  { %v919_v21 = vpop.f32.mrf.mxu1  ;;  %v990_v8 = vpop.f32.mrf.mxu0 }
 0x389   :  { %v921_v9 = vpop.f32.mrf.mxu1  ;;  %v992_v10 = vpop.f32.mrf.mxu0 }
 0x38a   :  { %v1020_v11 = vcombine.low %v919_v21, %v921_v9  ;;  %v1021_v12 = vcombine.low %v990_v8, %v992_v10 }
 0x38c   :  { %v1028_v13 = vrot.slane %v1020_v11, %v1444_v51  ;;  %v1035_v14 = vrot.slane %v1021_v12, %v1444_v51 }
 0x38e   :  { %v1036_v15 = vcombine.low %v1028_v13, %v1035_v14 }
 0x390   :  { %v1040_v16 = vmul.f32 %v1036_v15, %v1639_v56 }
 0x392   :  { %1042 = vst [vmem:[#allocation2 + $0x8] sm:$0xff] %v1040_v16 }
 0x393   :  { %1261 = shalt.err (!%p1258_p4)
}
 0x394   :  { %1052 = dma.vmem_to_hbm [thread:$0]  %s1050_s27, 256, %s1971_s5, [#allocation3]  }
 0x395   :  { %1270 = dma.done.wait [#allocation3], 256  }
 0x396   :  { %1271 = vsyncadd [#allocation3], 4294967040 }
 0x397   :  { %1056 = vsyncpa [#allocation3], 1 }

</bundles_post_ra>
